<compile_context>
chip_gen: v7x
topology: tpu7x:2x2x1
jax: 0.10.0
libtpu: 0.0.40
codegen_flags: <defaults>
</compile_context>

<pallas_src>
import jax
import jax.numpy as jnp
from jax.experimental import pallas as pl
from jax.experimental.pallas import tpu as pltpu


def _round_up(n, m):
    return (n + m - 1) // m * m


def _weightnet_kernel(x_ref, w1p_ref, w2t_ref, mexp_ref, o_ref):
    # x_ref   : (TB, F*E) lane-dense input tile (native dtype)
    # w1p_ref : (F*E, R)  first Linear weight with the 1/E mean fold applied
    # w2t_ref : (R, F)    second Linear weight, transposed, COMPACT (no replication)
    # mexp_ref: (F, F*E)  0/1 per-field replication matrix (applied post-sigmoid)
    x = x_ref[...]                                                     # (TB, F*E)
    h = jnp.dot(x, w1p_ref[...], preferred_element_type=jnp.float32)   # (TB, R)  MXU
    h = jnp.maximum(h, 0.0)                                            # ReLU     VPU
    s = jnp.dot(h, w2t_ref[...], preferred_element_type=jnp.float32)   # (TB, F)  MXU
    a_small = jax.nn.sigmoid(s)                                        # compact  EUP
    # Exact per-field replication via 0/1 matmul on the (mostly idle) MXU.
    a = jnp.dot(a_small, mexp_ref[...],
                preferred_element_type=jnp.float32)                    # (TB, F*E)
    o_ref[...] = (x * a.astype(x.dtype)).astype(o_ref.dtype)


def fold_weights(w1, w2, embed_dim, dtype=jnp.float32):
    """Precompute kernel weights once (hoisted out of the per-step call).

    w1: (R, F) = nn.Linear(field_size, reduction_size, bias=False).weight
    w2: (F, R) = nn.Linear(reduction_size, field_size, bias=False).weight
    Returns (w1p, w2t, mexp).
    """
    R, F = w1.shape
    E = embed_dim
    eye_f = jnp.eye(F, dtype=jnp.float32)
    # Mavg[(f*E+e), f'] = 1/E * [f==f']  -> folds mean(., axis=-1) into W1.
    mavg = jnp.repeat(eye_f, E, axis=0) / jnp.float32(E)         # (F*E, F)
    w1p = (mavg @ w1.astype(jnp.float32).T).astype(dtype)        # (F*E, R)
    w2t = w2.astype(jnp.float32).T                               # (R, F), f32
    mexp = jnp.repeat(eye_f, E, axis=1)                          # (F, F*E), 0/1 f32
    return w1p, w2t, mexp


def weight_network_folded(inputs, w1p, w2t, mexp, *, tb=None,
                          vmem_limit_bytes=48 * 1024 * 1024,
                          donate_input=False):
    """inputs: (B, F, E); weights from fold_weights()."""
    B, F, E = inputs.shape
    FE = F * E
    R = w1p.shape[1]
    dtype = inputs.dtype
    itemsize = jnp.dtype(dtype).itemsize

    # ---- VMEM model with lane padding (minor dim rounds up to 128 lanes).
    fe_pad = _round_up(FE, 128)
    f_pad = _round_up(F, 128)
    r_pad = _round_up(R, 128)
    # 2x double-buffered input + output tiles (native dtype) + f32 intermediates
    # (h, sigmoid input/output, expanded a) in compiler scratch.
    per_row = 4 * fe_pad * itemsize + 4 * (fe_pad + f_pad + r_pad)
    budget = 24 * 1024 * 1024          # leave headroom under the scoped VMEM limit
    # Sublane packing: f32 -> 8 rows/sublane-tile, bf16 -> 16, int8/fp8 -> 32.
    align = max(8, 32 // itemsize)
    max_tb = max(align, (budget // per_row) // align * align)

    if tb is None:
        tb = min(4096, max_tb)
        if B > 256:
            # Keep >= ~4 batch tiles so both v7x TensorCores get work
            # (the batch axis is "parallel").
            tb = min(tb, _round_up(-(-B // 4), align))
    if tb >= B:
        tb = B                          # single block == full batch dim (legal)
    else:
        tb = max(align, (tb // align) * align)   # boundary block is masked

    x2d = inputs.reshape(B, FE)
    grid = (pl.cdiv(B, tb),)

    cost = pl.CostEstimate(
        flops=2 * B * FE * R + 2 * B * R * F + 2 * B * F * FE + B * FE,
        transcendentals=B * F,
        bytes_accessed=2 * B * FE * itemsize,
    )

    out2d = pl.pallas_call(
        _weightnet_kernel,
        out_shape=jax.ShapeDtypeStruct((B, FE), dtype),
        grid_spec=pltpu.PrefetchScalarGridSpec(
            num_scalar_prefetch=0,
            grid=grid,
            in_specs=[
                pl.BlockSpec((tb, FE), lambda b: (b, 0)),
                pl.BlockSpec((FE, R), lambda b: (0, 0)),
                pl.BlockSpec((R, F), lambda b: (0, 0)),
                pl.BlockSpec((F, FE), lambda b: (0, 0)),
            ],
            out_specs=pl.BlockSpec((tb, FE), lambda b: (b, 0)),
        ),
        compiler_params=pltpu.CompilerParams(
            dimension_semantics=("parallel",),   # shard batch tiles across TCs
            vmem_limit_bytes=vmem_limit_bytes,
        ),
        cost_estimate=cost,
        input_output_aliases={0: 0} if donate_input else {},
    )(x2d, w1p, w2t, mexp)

    return out2d.reshape(B, F, E)


def weight_network(inputs, w1, w2, **kwargs):
    """Convenience wrapper: fold weights then apply (prefer fold_weights once)."""
    w1p, w2t, mexp = fold_weights(w1, w2, inputs.shape[-1], dtype=inputs.dtype)
    return weight_network_folded(inputs, w1p, w2t, mexp, **kwargs)


def reference(inputs, w1, w2):
    hi = jax.lax.Precision.HIGHEST
    z = jnp.mean(inputs.astype(jnp.float32), axis=-1)
    h = jnp.maximum(jnp.dot(z, w1.astype(jnp.float32).T, precision=hi), 0.0)
    a = jax.nn.sigmoid(jnp.dot(h, w2.astype(jnp.float32).T, precision=hi))
    return inputs * a[..., None].astype(inputs.dtype)


if __name__ == "__main__":
    # Module hyper-params (deterministic, synthetic init)
    field_size = 12
    reduction_ratio = 3
    reduction_size = max(1, field_size // reduction_ratio)  # = 4

    batch = 2
    embed_dim = 16

    key = jax.random.PRNGKey(0)
    kx, k1, k2, kb, kc = jax.random.split(key, 5)

    inputs = jax.random.normal(kx, (batch, field_size, embed_dim), dtype=jnp.float32)
    # nn.Linear(field_size, reduction_size, bias=False).weight -> (R, F)
    w1 = jax.random.normal(k1, (reduction_size, field_size), dtype=jnp.float32) * 0.1
    # nn.Linear(reduction_size, field_size, bias=False).weight -> (F, R)
    w2 = jax.random.normal(k2, (field_size, reduction_size), dtype=jnp.float32) * 0.1

    # Hoist the static weight folding out of the per-call path.
    w1p, w2t, mexp = fold_weights(w1, w2, embed_dim, dtype=inputs.dtype)

    out = jax.block_until_ready(weight_network_folded(inputs, w1p, w2t, mexp))
    ref = reference(inputs, w1, w2)
    assert out.shape == (batch, field_size, embed_dim)
    assert jnp.allclose(out, ref, atol=1e-5, rtol=1e-5)

    # Multi-tile path with a partial boundary block (B % tb != 0).
    big = jax.random.normal(kb, (100, field_size, embed_dim), dtype=jnp.float32)
    out_big = jax.block_until_ready(weight_network_folded(big, w1p, w2t, mexp, tb=32))
    assert jnp.allclose(out_big, reference(big, w1, w2), atol=1e-5, rtol=1e-5)

    # Default tb path that exercises the >=4-tiles (megacore) selection.
    huge = jax.random.normal(kc, (600, field_size, embed_dim), dtype=jnp.float32)
    out_huge = jax.block_until_ready(weight_network(huge, w1, w2))
    assert jnp.allclose(out_huge, reference(huge, w1, w2), atol=1e-5, rtol=1e-5)

    print("KERNEL_OK")
</pallas_src>

<mosaic_0001>
module attributes {stable_mosaic.version = 11 : i64} {
  func.func @_weightnet_kernel(%arg0: i32, %arg1: memref<2x192xf32, #tpu.memory_space<vmem>>, %arg2: memref<192x4xf32, #tpu.memory_space<vmem>>, %arg3: memref<4x12xf32, #tpu.memory_space<vmem>>, %arg4: memref<12x192xf32, #tpu.memory_space<vmem>>, %arg5: memref<2x192xf32, #tpu.memory_space<vmem>>) attributes {dimension_semantics = [#tpu.dimension_semantics<parallel>], iteration_bounds = array<i64: 1>, scalar_prefetch = 0 : i64, scratch_operands = 0 : i64, tpu.core_type = #tpu.core_type<tc>, window_params = [{transform_indices = @transform_0, window_bounds = array<i64: 2, 192>}, {pipeline_mode = #tpu.pipeline_mode<synchronous>, transform_indices = @transform_1, window_bounds = array<i64: 192, 4>}, {pipeline_mode = #tpu.pipeline_mode<synchronous>, transform_indices = @transform_2, window_bounds = array<i64: 4, 12>}, {pipeline_mode = #tpu.pipeline_mode<synchronous>, transform_indices = @transform_3, window_bounds = array<i64: 12, 192>}, {transform_indices = @transform_4, window_bounds = array<i64: 2, 192>}]} {
    %c0 = arith.constant 0 : index
    %c0_0 = arith.constant 0 : index
    %0 = vector.load %arg1[%c0, %c0_0] : memref<2x192xf32, #tpu.memory_space<vmem>>, vector<2x192xf32>
    %c0_1 = arith.constant 0 : index
    %c0_2 = arith.constant 0 : index
    %1 = vector.load %arg2[%c0_1, %c0_2] : memref<192x4xf32, #tpu.memory_space<vmem>>, vector<192x4xf32>
    %cst = arith.constant dense<0.000000e+00> : vector<2x4xf32>
    %2 = tpu.matmul %0, %1, %cst {dimension_numbers = #tpu.dot_dimension_numbers<[1], [0], [0], [1], [0, 0, 1, 1], [], []>} : vector<2x192xf32>, vector<192x4xf32>, vector<2x4xf32> -> vector<2x4xf32>
    %cst_3 = arith.constant 0.000000e+00 : f32
    %3 = vector.broadcast %cst_3 : f32 to vector<2x4xf32>
    %4 = arith.maximumf %2, %3 : vector<2x4xf32>
    %c0_4 = arith.constant 0 : index
    %c0_5 = arith.constant 0 : index
    %5 = vector.load %arg3[%c0_4, %c0_5] : memref<4x12xf32, #tpu.memory_space<vmem>>, vector<4x12xf32>
    %cst_6 = arith.constant dense<0.000000e+00> : vector<2x12xf32>
    %6 = tpu.matmul %4, %5, %cst_6 {dimension_numbers = #tpu.dot_dimension_numbers<[1], [0], [0], [1], [0, 0, 1, 1], [], []>} : vector<2x4xf32>, vector<4x12xf32>, vector<2x12xf32> -> vector<2x12xf32>
    %7 = arith.negf %6 : vector<2x12xf32>
    %8 = math.exp %7 : vector<2x12xf32>
    %cst_7 = arith.constant 1.000000e+00 : f32
    %9 = vector.broadcast %cst_7 : f32 to vector<2x12xf32>
    %10 = arith.addf %9, %8 : vector<2x12xf32>
    %11 = arith.divf %9, %10 : vector<2x12xf32>
    %c0_8 = arith.constant 0 : index
    %c0_9 = arith.constant 0 : index
    %12 = vector.load %arg4[%c0_8, %c0_9] : memref<12x192xf32, #tpu.memory_space<vmem>>, vector<12x192xf32>
    %cst_10 = arith.constant dense<0.000000e+00> : vector<2x192xf32>
    %13 = tpu.matmul %11, %12, %cst_10 {dimension_numbers = #tpu.dot_dimension_numbers<[1], [0], [0], [1], [0, 0, 1, 1], [], []>} : vector<2x12xf32>, vector<12x192xf32>, vector<2x192xf32> -> vector<2x192xf32>
    %14 = arith.mulf %0, %13 : vector<2x192xf32>
    %c0_11 = arith.constant 0 : index
    %c0_12 = arith.constant 0 : index
    %15 = vector.load %arg5[%c0_11, %c0_12] : memref<2x192xf32, #tpu.memory_space<vmem>>, vector<2x192xf32>
    tpu.vector_store %arg5[%c0_11, %c0_12], %14 {strides = array<i32>} : memref<2x192xf32, #tpu.memory_space<vmem>>, vector<2x192xf32>,
    return
  }
  func.func @transform_0(%arg0: i32) -> (i32, i32) {
    %c0_i32 = arith.constant 0 : i32
    %c0_i32_0 = arith.constant 0 : i32
    return %arg0, %c0_i32 : i32, i32
  }
  func.func @transform_1(%arg0: i32) -> (i32, i32) {
    %c0_i32 = arith.constant 0 : i32
    %c0_i32_0 = arith.constant 0 : i32
    %c0_i32_1 = arith.constant 0 : i32
    return %c0_i32, %c0_i32_0 : i32, i32
  }
  func.func @transform_2(%arg0: i32) -> (i32, i32) {
    %c0_i32 = arith.constant 0 : i32
    %c0_i32_0 = arith.constant 0 : i32
    %c0_i32_1 = arith.constant 0 : i32
    return %c0_i32, %c0_i32_0 : i32, i32
  }
  func.func @transform_3(%arg0: i32) -> (i32, i32) {
    %c0_i32 = arith.constant 0 : i32
    %c0_i32_0 = arith.constant 0 : i32
    %c0_i32_1 = arith.constant 0 : i32
    return %c0_i32, %c0_i32_0 : i32, i32
  }
  func.func @transform_4(%arg0: i32) -> (i32, i32) {
    %c0_i32 = arith.constant 0 : i32
    %c0_i32_0 = arith.constant 0 : i32
    return %arg0, %c0_i32 : i32, i32
  }
}

</mosaic_0001>

<bundles_post_ra>
// kernel: tpu_custom_call.1
= control target key start
LH: loop header
LB: loop body
LE: loop exit
PB: predicated region body
PF: predicated region fallthrough
CT: control target
= control target key end

     0   :  { %v47_v3 = vlaneseq  ;;  %v417_v4 = vmov 0.0|0.0   ;;  %v418_v7 = vmov 1983009808   ;;  %s570_s0 = inlined_call_operand.vmem [shape: f32[2,192], index: 0, kind: input, shape index: {}]   ;;  %s571_s1 = inlined_call_operand.vmem [shape: f32[192,4], index: 1, kind: input, shape index: {}]   ;;  %s572_s2 = inlined_call_operand.vmem [shape: f32[4,12], index: 2, kind: input, shape index: {}]   ;;  %s573_s3 = inlined_call_operand.vmem [shape: f32[12,192], index: 3, kind: input, shape index: {}]   ;;  %s574_s4 = inlined_call_operand.hbm [shape: f32[2,192], index: 4, kind: output, shape index: {}]  }
   0x1   :  { %v19_v0 = vld [vmem:[%s571_s1] sm:$0xff]  ;;  %v20_v1 = vld [vmem:[%s571_s1 + $0x8] sm:$0xff]  ;;  %v21_v2 = vld [vmem:[%s571_s1 + $0x10] sm:$0xff]  ;;  %341 = vmatprep.subr.bf16.mxu0 %v417_v4  ;;  %v45_v8 = vunpack.c.l.s4 %v418_v7 }
   0x2   :  { %v342_v5 = vpack.c.bf16 %v20_v1, %v19_v0  ;;  %v22_v6 = vld [vmem:[%s571_s1 + $0x18] sm:$0xff]  ;;  %v48_v9 = vshrl.u32 %v47_v3, 7  ;;  %v23_v12 = vld [vmem:[%s571_s1 + $0x20] sm:$0xff]  ;;  %v24_v13 = vld [vmem:[%s571_s1 + $0x28] sm:$0xff] }
   0x3   :  { %v345_v10 = vpack.c.bf16 %v22_v6, %v21_v2  ;;  %v46_v11 = vunpack.c.0.s8 %v45_v8  ;;  %v348_v15 = vpack.c.bf16 %v24_v13, %v23_v12  ;;  %v25_v16 = vld [vmem:[%s571_s1 + $0x30] sm:$0xff]  ;;  %v26_v17 = vld [vmem:[%s571_s1 + $0x38] sm:$0xff]  ;;  %v480_v18 = vld [vmem:[%s570_s0] sm:$0xf] }
   0x4   :  { %343 = vmatpush1.bf16.msra.mxu0 %v342_v5 }
   0x5   :  { %344 = vmatprep.subr.bf16.mxu0 %v417_v4  ;;  %v468_v14 = vsub.s32 %v46_v11, %v48_v9 }
   0x8   :  { %346 = vmatpush1.bf16.msra.mxu0 %v345_v10 }
   0x9   :  { %347 = vmatprep.subr.bf16.mxu0 %v417_v4 }
   0xa   :  { %9 = vsyncpa [#allocation3], 0  ;;  %v50_v19 = vrot.slane %v480_v18, %v468_v14  ;;  %vm53_vm0 = vcmask 523264   ;;  %v351_v20 = vpack.c.bf16 %v26_v17, %v25_v16  ;;  %v27_v22 = vld [vmem:[%s571_s1 + $0x40] sm:$0xff]  ;;  %v28_v23 = vld [vmem:[%s571_s1 + $0x48] sm:$0xff]  ;;  %v419_v46 = vmov 0.0  }
   0xb   :  { %v354_v24 = vpack.c.bf16 %v28_v23, %v27_v22  ;;  %v29_v25 = vld [vmem:[%s571_s1 + $0x50] sm:$0xff]  ;;  %v30_v26 = vld [vmem:[%s571_s1 + $0x58] sm:$0xff]  ;;  %v31_v28 = vld [vmem:[%s571_s1 + $0x60] sm:$0xff]  ;;  %336 = vmatprep.subr.mxu1 %v419_v46  ;;  %vm132_vm1 = vcmask 1043456   ;;  %vm420_vm2 = vmmov 0   ;;  %vm128_vm3 = vcmask 31744  }
   0xc   :  { %349 = vmatpush1.bf16.msra.mxu0 %v348_v15  ;;  %v51_v21 = vcombine.high %v50_v19, %v50_v19  ;;  %v357_v27 = vpack.c.bf16 %v30_v26, %v29_v25  ;;  %v32_v29 = vld [vmem:[%s571_s1 + $0x68] sm:$0xff]  ;;  %v33_v31 = vld [vmem:[%s571_s1 + $0x70] sm:$0xff]  ;;  %v34_v32 = vld [vmem:[%s571_s1 + $0x78] sm:$0xff]  ;;  %338 = vmatprep.mubr.msk.f32.mxu1 %vm420_vm2, %v419_v46  ;;  %vm421_vm4 = vmmov 1   ;;  %vm216_vm6 = vcmask 97280   ;;  %s422_s19 = smov [#allocation2]  }
   0xd   :  { %350 = vmatprep.subr.bf16.mxu0 %v417_v4  ;;  %v360_v30 = vpack.c.bf16 %v32_v29, %v31_v28  ;;  %v363_v33 = vpack.c.bf16 %v34_v32, %v33_v31  ;;  %v35_v34 = vld [vmem:[%s571_s1 + $0x80] sm:$0xff]  ;;  %v36_v35 = vld [vmem:[%s571_s1 + $0x88] sm:$0xff]  ;;  %v37_v37 = vld [vmem:[%s571_s1 + $0x90] sm:$0xff]  ;;  %vm309_vm7 = vcmask 1041408   ;;  %vm310_vm8 = vcmask 519170  }
   0xe   :  { %327 = vmatprep.mubr.msk.f32.mxu0 %vm53_vm0, %v51_v21  ;;  %v366_v36 = vpack.c.bf16 %v36_v35, %v35_v34  ;;  %v38_v38 = vld [vmem:[%s571_s1 + $0x98] sm:$0xff]  ;;  %v39_v40 = vld [vmem:[%s571_s1 + $0xa0] sm:$0xff]  ;;  %v40_v41 = vld [vmem:[%s571_s1 + $0xa8] sm:$0xff] }
   0xf   :  { %v369_v39 = vpack.c.bf16 %v38_v38, %v37_v37  ;;  %v372_v42 = vpack.c.bf16 %v40_v41, %v39_v40  ;;  %v41_v43 = vld [vmem:[%s571_s1 + $0xb0] sm:$0xff]  ;;  %v42_v44 = vld [vmem:[%s571_s1 + $0xb8] sm:$0xff]  ;;  %v127_v47 = vld [vmem:[%s572_s2] sm:$0xf] }
  0x10   :  { %352 = vmatpush1.bf16.msra.mxu0 %v351_v20  ;;  %v375_v45 = vpack.c.bf16 %v42_v44, %v41_v43  ;;  %337 = vmatpush3.msk.msra.mxu1 %vm132_vm1, %v127_v47  ;;  %vm378_vm5 = vmpackc.low %vm132_vm1, %vm421_vm4  ;;  %v213_v51 = vld [vmem:[%s573_s3 + $0x8] sm:$0xff]  ;;  %v215_v52 = vld [vmem:[%s573_s3 + $0x18] sm:$0xf] }
  0x11   :  { %353 = vmatprep.subr.bf16.mxu0 %v417_v4  ;;  %v212_v53 = vld [vmem:[%s573_s3] sm:$0xff]  ;;  %v377_v54 = vpack.c.bf16 %v215_v52, %v213_v51  ;;  %v214_v55 = vld [vmem:[%s573_s3 + $0x10] sm:$0xf]  ;;  %s319_s3 = sshll.u32 %s422_s19, 4  ;;  %vm311_vm9 = vmor %vm310_vm8, %vm309_vm7  ;;  %s320_s3 = int_to_ptr.vmem [resolvable:$true] %s319_s3 }
  0x12   :  { %v380_v56 = vpack.c.bf16 %v214_v55, %v212_v53  ;;  %s393_s20 = scalar_lea.vmem %s320_s3, 64  ;;  %p398_p1 = scmp.lt.s32.totalorder %s320_s3, %s320_s3 }
  0x13   :  { %379 = vmatprep.subr.msk.bf16.mxu1 %vm378_vm5, %v377_v54  ;;  %p394_p0 = scmp.ne.s32.totalorder %s320_s3, %s393_s20  ;;  %p399_p2 = scmp.lt.s32.totalorder %s393_s20, %s393_s20 }
  0x14   :  { %355 = vmatpush1.bf16.msra.mxu0 %v354_v24 }
  0x15   :  { %356 = vmatprep.subr.bf16.mxu0 %v417_v4  ;;  %p400_p3 = por %p399_p2, %p398_p1 }
  0x17   :  { %p401_p4 = pnand %p400_p3, %p394_p0 }
  0x18   :  { %358 = vmatpush1.bf16.msra.mxu0 %v357_v27 }
  0x19   :  { %359 = vmatprep.subr.bf16.mxu0 %v417_v4 }
  0x1c   :  { %361 = vmatpush1.bf16.msra.mxu0 %v360_v30 }
  0x1d   :  { %362 = vmatprep.subr.bf16.mxu0 %v417_v4 }
  0x20   :  { %364 = vmatpush1.bf16.msra.mxu0 %v363_v33 }
  0x21   :  { %365 = vmatprep.subr.bf16.mxu0 %v417_v4 }
  0x24   :  { %367 = vmatpush1.bf16.msra.mxu0 %v366_v36 }
  0x25   :  { %368 = vmatprep.subr.bf16.mxu0 %v417_v4 }
  0x28   :  { %370 = vmatpush1.bf16.msra.mxu0 %v369_v39 }
  0x29   :  { %371 = vmatprep.subr.bf16.mxu0 %v417_v4 }
  0x2c   :  { %373 = vmatpush1.bf16.msra.mxu0 %v372_v42 }
  0x2d   :  { %374 = vmatprep.subr.bf16.mxu0 %v417_v4 }
  0x30   :  { %376 = vmatpush1.bf16.msra.mxu0 %v375_v45 }
  0x33   :  { %121 = vmatmul.mubr.f32.vlgmr.msra.gmra.mrb[0].mxu0 %v50_v19 }
 0x106   :  { %v122_v48 = vpop.f32.mrb[0].mxu0 }
 0x107   :  { %v126_v49 = vmax.f32 %v122_v48, 0.0  ;;  %v124_v50 = vpop.f32.mrb[1].mxu0 }
 0x109   :  { %339 = vmatmul.mubr.msk.f32.vlgmr.msra.gmra.mrb[0].mxu1 %vm128_vm3, %v126_v49 }
 0x10a   :  { %290 = vmatprep.mubr.f32.mxu1 %v419_v46  ;;  %382 = vmatpush1.bf16.msk.msra.mxu1 %vm378_vm5, %v380_v56 }
 0x1dc   :  { %v202_v57 = vpop.f32.mrb[0].mxu1 }
 0x1dd   :  { %v330_v58 = vmul.f32 -1.442695, %v202_v57  ;;  %v340_v59 = vpop.f32.mrb[1].mxu1 }
 0x1df   :  { %389 = vpow2.f32 %v330_v58 }
 0x1e9   :  { %v390_v60 = vpop.eup %389 }
 0x1ea   :  { %v209_v61 = vadd.f32 1.0, %v390_v60 }
 0x1ec   :  { %391 = vrcp.f32 %v209_v61 }
 0x1f6   :  { %v392_v62 = vpop.eup %391 }
 0x1f7   :  { %333 = vmatmul.mubr.msk.f32.vlgmr.msra.gmra.mrb[2].mxu1 %vm216_vm6, %v392_v62 }
 0x2ca   :  { %v292_v63 = vpop.f32.mrb[2].mxu1 }
 0x2cb   :  { %v294_v0 = vpop.f32.mrb[3].mxu1 }
 0x2cc   :  { %v299_v1 = vcombine.low %v292_v63, %v294_v0 }
 0x2ce   :  { %v306_v2 = vrot.slane %v299_v1, %v468_v14 }
 0x2d0   :  { %v308_v3 = vmul.f32 %v306_v2, %v480_v18 }
 0x2d2   :  { %312 = vst.msk [vmem:[#allocation2] sm:$0xf] %vm311_vm9, %v308_v3 }
 0x2d3   :  { %404 = shalt.err (!%p401_p4)
}
 0x2d4   :  { %s405_s23 = scalar_lea.hbm %s574_s4, 64 }
 0x2d5   :  { %p406_p5 = scmp.ne.s32.totalorder %s574_s4, %s405_s23  ;;  %p409_p6 = scmp.lt.u32.totalorder %s405_s23, %s574_s4 }
 0x2d7   :  { %p411_p7 = pnand %p409_p6, %p406_p5 }
 0x2d9   :  { %414 = shalt.err (!%p411_p7)
}
 0x2da   :  { %322 = dma.vmem_to_hbm [thread:$0]  %s320_s3, 64, %s574_s4, [#allocation3]  }
 0x2db   :  { %415 = dma.done.wait [#allocation3], 64  }
 0x2dc   :  { %416 = vsyncadd [#allocation3], 4294967232 }
 0x2dd   :  { %326 = vsyncpa [#allocation3], 1 }

</bundles_post_ra>
